<compile_context>
chip_gen: v7x
topology: tpu7x:2x2x1
jax: 0.10.0
libtpu: 0.0.40
codegen_flags: <defaults>
</compile_context>

<pallas_src>
import functools
import math

import jax
import jax.numpy as jnp
from jax import lax
from jax.experimental import pallas as pl
from jax.experimental.pallas import tpu as pltpu

_MIB = 1024 * 1024


def _device_kind() -> str:
    try:
        return jax.devices()[0].device_kind.lower()
    except Exception:
        return ""


def _head_group_size(num_heads: int, head_dim: int, mxu_target: int) -> int:
    """Smallest divisor g of num_heads with g*head_dim >= 128 (lane-dense groups).

    Optionally doubled once to fill a 256-wide MXU (v6e/v7x) when that still
    divides num_heads and does not overshoot the MXU width.
    """
    g = num_heads
    for cand in range(1, num_heads + 1):
        if num_heads % cand == 0 and cand * head_dim >= 128:
            g = cand
            break
    if (g * head_dim < mxu_target and num_heads % (2 * g) == 0
            and 2 * g * head_dim <= mxu_target):
        g *= 2
    return g


def _rnn_recurrence_kernel(proj_ref, w_ref, h_ref, state_ref, *, unroll):
    """One (head-group block, time chunk) grid step of the tanh RNN recurrence.

    proj_ref : (T, gb, B, G)   precomputed in_proj slice for this time chunk
    w_ref    : (gb, G, G)      block-diagonal per-group state weights
    h_ref    : (T, gb, B, G)   hidden-state outputs for this chunk
    state_ref: (gb, B, G) f32  carried recurrent state (VMEM scratch)

    Relies on the time axis being the innermost grid axis (per head block the
    time index restarts at 0, re-initializing the carried state).
    """
    t_blk = pl.program_id(1)

    @pl.when(t_blk == 0)
    def _():
        # input_state is None in the reference -> zeros
        state_ref[...] = jnp.zeros_like(state_ref)

    w = w_ref[...]                       # loaded once per chunk, reused for T steps
    T = proj_ref.shape[0]

    def step(i, state):
        # per-group batched matmul: (gb, B, G) x (gb, G, G) -> (gb, B, G)
        z = lax.dot_general(
            state.astype(w.dtype), w,
            dimension_numbers=(((2,), (1,)), ((0,), (0,))),
            preferred_element_type=jnp.float32)
        new = jnp.tanh(z + proj_ref[i].astype(jnp.float32))   # tanh / add in f32
        h_ref[i] = new.astype(h_ref.dtype)
        return new

    # bounded unroll: keeps LLO scheduler visibility without blowing up vregs
    state_ref[...] = lax.fori_loop(0, T, step, state_ref[...], unroll=unroll)


def rnn_forward(x, w_in, b_in, state_weight, w_out, *,
                time_block=64, head_blocks=None, matmul_dtype=None):
    """x: (B, S, D_in) -> (B, S, D_out). state_weight: (N, H, H)."""
    B, S, D_in = x.shape
    N, H, _ = state_weight.shape
    D_out = w_out.shape[1]

    kind = _device_kind()
    is_v7 = "v7" in kind
    mxu_target = 256 if (is_v7 or "v6" in kind) else 128

    # ---- head grouping: g consecutive heads -> one lane-dense group of width G ----
    g = _head_group_size(N, H, mxu_target)
    NG, G = N // g, g * H
    if g == 1:
        w_grouped = state_weight                               # (N, H, H)
    else:
        sw = state_weight.reshape(NG, g, H, H)
        eye = jnp.eye(g, dtype=state_weight.dtype)
        # block-diagonal: W[n, j*H+i, k*H+l] = sw[n, j, i, l] * delta(j, k)
        w_grouped = jnp.einsum("njil,jk->njikl", sw, eye).reshape(NG, G, G)
    if matmul_dtype is not None:
        # optional precision/speed trade-off (e.g. bf16); default keeps module dtype
        w_grouped = w_grouped.astype(matmul_dtype)

    # ---- head blocks: only split on multi-TensorCore chips (v7x) ----
    if head_blocks is None:
        head_blocks = 2 if (is_v7 and NG % 2 == 0) else 1
    assert NG % head_blocks == 0
    gb = NG // head_blocks

    itemsize = jnp.dtype(x.dtype).itemsize
    w_itemsize = jnp.dtype(w_grouped.dtype).itemsize

    def chunk_bytes(t):
        io = 2 * 2 * (t * gb * B * G * itemsize)   # in + out chunk, double-buffered
        wb = 2 * gb * G * G * w_itemsize           # weight block (double-buffered)
        st = gb * B * G * 4                        # f32 state scratch
        return io + wb + st

    if is_v7 or not kind:                          # 64 MiB physical VMEM (or unknown)
        chunk_budget, vmem_cap = 28 * _MIB, 48 * _MIB
    else:                                          # v5e / v6e: 128 MiB physical VMEM
        chunk_budget, vmem_cap = 64 * _MIB, 100 * _MIB

    # ---- time chunking: T = ceil(S / num_chunks); pad S to a multiple of T ----
    num_chunks = max(1, pl.cdiv(S, max(1, time_block)))
    T = pl.cdiv(S, num_chunks)
    while chunk_bytes(T) > chunk_budget and T > 8:
        num_chunks += 1
        T = pl.cdiv(S, num_chunks)
    S_pad = T * num_chunks
    unroll = max(1, min(8, T))

    # ---- hoisted input projection: one big XLA matmul into (S, NG, B, G) layout ----
    proj = jnp.einsum("bsd,dng->snbg", x, w_in.reshape(D_in, NG, G))
    proj = (proj + b_in.reshape(1, NG, 1, G)).astype(x.dtype)
    if S_pad != S:
        # padded tail timesteps come after all real ones and are discarded below
        proj = jnp.pad(proj, ((0, S_pad - S), (0, 0), (0, 0), (0, 0)))

    cost = pl.CostEstimate(
        flops=2 * S_pad * B * NG * G * G,
        transcendentals=S_pad * B * NG * G,
        bytes_accessed=(2 * S_pad * NG * B * G + NG * G * G) * itemsize,
    )

    hs = pl.pallas_call(
        functools.partial(_rnn_recurrence_kernel, unroll=unroll),
        out_shape=jax.ShapeDtypeStruct((S_pad, NG, B, G), x.dtype),
        grid_spec=pltpu.PrefetchScalarGridSpec(
            num_scalar_prefetch=0,
            grid=(head_blocks, num_chunks),        # (parallel head groups, sequential time)
            in_specs=[
                pl.BlockSpec((T, gb, B, G), lambda h, t: (t, h, 0, 0)),   # proj chunk
                pl.BlockSpec((gb, G, G), lambda h, t: (h, 0, 0)),         # group weights
            ],
            out_specs=pl.BlockSpec((T, gb, B, G), lambda h, t: (t, h, 0, 0)),
            scratch_shapes=[pltpu.VMEM((gb, B, G), jnp.float32)],         # f32 state
        ),
        compiler_params=pltpu.CompilerParams(
            dimension_semantics=("parallel", "arbitrary"),   # time must stay sequential
            vmem_limit_bytes=int(min(vmem_cap,
                                     max(8 * _MIB, chunk_bytes(T) + 16 * _MIB))),
        ),
        cost_estimate=cost,
    )(proj, w_grouped)

    hs = hs[:S]   # drop padded timesteps

    # ---- hoisted output projection ----
    y = jnp.einsum("snbg,ngd->bsd", hs, w_out.reshape(NG, G, D_out))
    return y.astype(x.dtype)


def rnn_reference(x, w_in, b_in, state_weight, w_out):
    """Pure-JAX reference mirroring the PyTorch _torch_forward + projections."""
    B, S, _ = x.shape
    N, H, _ = state_weight.shape
    proj = (x @ w_in + b_in).reshape(B, S, N, H)

    def step(state, p):
        new = jnp.tanh(jnp.einsum("bnh,nhk->bnk", state, state_weight) + p)
        return new, new

    _, hs = jax.lax.scan(step, jnp.zeros((B, N, H), jnp.float32),
                         jnp.swapaxes(proj, 0, 1))
    hs = jnp.swapaxes(hs, 0, 1).reshape(B, S, N * H)
    return hs @ w_out


if __name__ == "__main__":
    # small shapes consistent with the module
    B, S = 2, 8
    input_size, state_size, output_size, num_heads = 32, 32, 32, 4
    num_layers = 2
    initializer_range = 1.0
    H = state_size // num_heads

    key = jax.random.PRNGKey(0)
    k1, k2, k3, k4, k5 = jax.random.split(key, 5)

    x = jax.random.normal(k1, (B, S, input_size), jnp.float32)

    # Deterministic synthetic parameter init (shapes from __init__):
    # input_projection: Linear(input_size -> state_size, bias=True)
    w_in = jax.random.normal(k2, (input_size, state_size), jnp.float32) * (
        initializer_range / math.sqrt(input_size))
    b_in = jax.random.normal(k3, (state_size,), jnp.float32) * 0.01
    # state_weight: (num_heads, H, H)
    state_weight = jax.random.normal(k4, (num_heads, H, H), jnp.float32) * (
        initializer_range / math.sqrt(H))
    # output_projection: Linear(state_size -> output_size, bias=False)
    w_out = jax.random.normal(k5, (state_size, output_size), jnp.float32) * (
        initializer_range / math.sqrt(2 * num_layers) / math.sqrt(state_size))

    out = rnn_forward(x, w_in, b_in, state_weight, w_out)
    out = jax.block_until_ready(out)

    ref = rnn_reference(x, w_in, b_in, state_weight, w_out)
    assert out.shape == (B, S, output_size)
    assert jnp.allclose(out, ref, rtol=2e-5, atol=2e-5), "mismatch vs reference"

    print("KERNEL_OK")
</pallas_src>

<mosaic_0001>
module attributes {stable_mosaic.version = 11 : i64} {
  func.func @_rnn_recurrence_kernel(%arg0: i32, %arg1: i32, %arg2: memref<8x1x2x32xf32, #tpu.memory_space<vmem>>, %arg3: memref<1x32x32xf32, #tpu.memory_space<vmem>>, %arg4: memref<8x1x2x32xf32, #tpu.memory_space<vmem>>, %arg5: memref<1x2x32xf32, #tpu.memory_space<vmem>>) attributes {dimension_semantics = [#tpu.dimension_semantics<parallel>, #tpu.dimension_semantics<arbitrary>], iteration_bounds = array<i64: 1, 1>, scalar_prefetch = 0 : i64, scratch_operands = 1 : i64, tpu.core_type = #tpu.core_type<tc>, window_params = [{transform_indices = @transform_0, window_bounds = array<i64: 8, 1, 2, 32>}, {transform_indices = @transform_1, window_bounds = array<i64: 1, 32, 32>}, {transform_indices = @transform_2, window_bounds = array<i64: 8, 1, 2, 32>}]} {
    %c0_i32 = arith.constant 0 : i32
    %0 = arith.cmpi eq, %arg1, %c0_i32 : i32
    %1 = arith.extui %0 : i1 to i32
    %c0_i32_0 = arith.constant 0 : i32
    %2 = arith.cmpi ne, %1, %c0_i32_0 : i32
    scf.if %2 {
      %cst_65 = arith.constant 0.000000e+00 : f32
      %86 = vector.broadcast %cst_65 : f32 to vector<1x2x32xf32>
      %c0_66 = arith.constant 0 : index
      %c0_67 = arith.constant 0 : index
      %c0_68 = arith.constant 0 : index
      %87 = vector.load %arg5[%c0_66, %c0_67, %c0_68] : memref<1x2x32xf32, #tpu.memory_space<vmem>>, vector<1x2x32xf32>
      tpu.vector_store %arg5[%c0_66, %c0_67, %c0_68], %86 {strides = array<i32>} : memref<1x2x32xf32, #tpu.memory_space<vmem>>, vector<1x2x32xf32>,
    } else {
    }
    %c0 = arith.constant 0 : index
    %c0_1 = arith.constant 0 : index
    %c0_2 = arith.constant 0 : index
    %3 = vector.load %arg3[%c0, %c0_1, %c0_2] : memref<1x32x32xf32, #tpu.memory_space<vmem>>, vector<1x32x32xf32>
    %c0_3 = arith.constant 0 : index
    %c0_4 = arith.constant 0 : index
    %c0_5 = arith.constant 0 : index
    %4 = vector.load %arg5[%c0_3, %c0_4, %c0_5] : memref<1x2x32xf32, #tpu.memory_space<vmem>>, vector<1x2x32xf32>
    %c0_i32_6 = arith.constant 0 : i32
    %cst = arith.constant dense<0.000000e+00> : vector<1x2x32xf32>
    %5 = tpu.matmul %4, %3, %cst {dimension_numbers = #tpu.dot_dimension_numbers<[2], [1], [1], [2], [0, 0, 0, 1, 1, 2], [0], [0]>} : vector<1x2x32xf32>, vector<1x32x32xf32>, vector<1x2x32xf32> -> vector<1x2x32xf32>
    %6 = arith.index_cast %c0_i32_6 : i32 to index
    %c0_7 = arith.constant 0 : index
    %c0_8 = arith.constant 0 : index
    %c0_9 = arith.constant 0 : index
    %7 = vector.load %arg2[%6, %c0_7, %c0_8, %c0_9] : memref<8x1x2x32xf32, #tpu.memory_space<vmem>>, vector<1x1x2x32xf32>
    %8 = vector.shape_cast %7 : vector<1x1x2x32xf32> to vector<1x2x32xf32>
    %9 = arith.addf %5, %8 : vector<1x2x32xf32>
    %10 = math.tanh %9 : vector<1x2x32xf32>
    %11 = arith.index_cast %c0_i32_6 : i32 to index
    %c0_10 = arith.constant 0 : index
    %c0_11 = arith.constant 0 : index
    %c0_12 = arith.constant 0 : index
    %12 = vector.load %arg4[%11, %c0_10, %c0_11, %c0_12] : memref<8x1x2x32xf32, #tpu.memory_space<vmem>>, vector<1x1x2x32xf32>
    %13 = vector.shape_cast %12 : vector<1x1x2x32xf32> to vector<1x2x32xf32>
    %14 = vector.shape_cast %10 : vector<1x2x32xf32> to vector<1x1x2x32xf32>
    tpu.vector_store %arg4[%11, %c0_10, %c0_11, %c0_12], %14 {strides = array<i32>} : memref<8x1x2x32xf32, #tpu.memory_space<vmem>>, vector<1x1x2x32xf32>,
    %c1_i32 = arith.constant 1 : i32
    %cst_13 = arith.constant dense<0.000000e+00> : vector<1x2x32xf32>
    %15 = tpu.matmul %10, %3, %cst_13 {dimension_numbers = #tpu.dot_dimension_numbers<[2], [1], [1], [2], [0, 0, 0, 1, 1, 2], [0], [0]>} : vector<1x2x32xf32>, vector<1x32x32xf32>, vector<1x2x32xf32> -> vector<1x2x32xf32>
    %16 = arith.index_cast %c1_i32 : i32 to index
    %c0_14 = arith.constant 0 : index
    %c0_15 = arith.constant 0 : index
    %c0_16 = arith.constant 0 : index
    %17 = vector.load %arg2[%16, %c0_14, %c0_15, %c0_16] : memref<8x1x2x32xf32, #tpu.memory_space<vmem>>, vector<1x1x2x32xf32>
    %18 = vector.shape_cast %17 : vector<1x1x2x32xf32> to vector<1x2x32xf32>
    %19 = arith.addf %15, %18 : vector<1x2x32xf32>
    %20 = math.tanh %19 : vector<1x2x32xf32>
    %21 = arith.index_cast %c1_i32 : i32 to index
    %c0_17 = arith.constant 0 : index
    %c0_18 = arith.constant 0 : index
    %c0_19 = arith.constant 0 : index
    %22 = vector.load %arg4[%21, %c0_17, %c0_18, %c0_19] : memref<8x1x2x32xf32, #tpu.memory_space<vmem>>, vector<1x1x2x32xf32>
    %23 = vector.shape_cast %22 : vector<1x1x2x32xf32> to vector<1x2x32xf32>
    %24 = vector.shape_cast %20 : vector<1x2x32xf32> to vector<1x1x2x32xf32>
    tpu.vector_store %arg4[%21, %c0_17, %c0_18, %c0_19], %24 {strides = array<i32>} : memref<8x1x2x32xf32, #tpu.memory_space<vmem>>, vector<1x1x2x32xf32>,
    %c2_i32 = arith.constant 2 : i32
    %cst_20 = arith.constant dense<0.000000e+00> : vector<1x2x32xf32>
    %25 = tpu.matmul %20, %3, %cst_20 {dimension_numbers = #tpu.dot_dimension_numbers<[2], [1], [1], [2], [0, 0, 0, 1, 1, 2], [0], [0]>} : vector<1x2x32xf32>, vector<1x32x32xf32>, vector<1x2x32xf32> -> vector<1x2x32xf32>
    %26 = arith.index_cast %c2_i32 : i32 to index
    %c0_21 = arith.constant 0 : index
    %c0_22 = arith.constant 0 : index
    %c0_23 = arith.constant 0 : index
    %27 = vector.load %arg2[%26, %c0_21, %c0_22, %c0_23] : memref<8x1x2x32xf32, #tpu.memory_space<vmem>>, vector<1x1x2x32xf32>
    %28 = vector.shape_cast %27 : vector<1x1x2x32xf32> to vector<1x2x32xf32>
    %29 = arith.addf %25, %28 : vector<1x2x32xf32>
    %30 = math.tanh %29 : vector<1x2x32xf32>
    %31 = arith.index_cast %c2_i32 : i32 to index
    %c0_24 = arith.constant 0 : index
    %c0_25 = arith.constant 0 : index
    %c0_26 = arith.constant 0 : index
    %32 = vector.load %arg4[%31, %c0_24, %c0_25, %c0_26] : memref<8x1x2x32xf32, #tpu.memory_space<vmem>>, vector<1x1x2x32xf32>
    %33 = vector.shape_cast %32 : vector<1x1x2x32xf32> to vector<1x2x32xf32>
    %34 = vector.shape_cast %30 : vector<1x2x32xf32> to vector<1x1x2x32xf32>
    tpu.vector_store %arg4[%31, %c0_24, %c0_25, %c0_26], %34 {strides = array<i32>} : memref<8x1x2x32xf32, #tpu.memory_space<vmem>>, vector<1x1x2x32xf32>,
    %c3_i32 = arith.constant 3 : i32
    %cst_27 = arith.constant dense<0.000000e+00> : vector<1x2x32xf32>
    %35 = tpu.matmul %30, %3, %cst_27 {dimension_numbers = #tpu.dot_dimension_numbers<[2], [1], [1], [2], [0, 0, 0, 1, 1, 2], [0], [0]>} : vector<1x2x32xf32>, vector<1x32x32xf32>, vector<1x2x32xf32> -> vector<1x2x32xf32>
    %36 = arith.index_cast %c3_i32 : i32 to index
    %c0_28 = arith.constant 0 : index
    %c0_29 = arith.constant 0 : index
    %c0_30 = arith.constant 0 : index
    %37 = vector.load %arg2[%36, %c0_28, %c0_29, %c0_30] : memref<8x1x2x32xf32, #tpu.memory_space<vmem>>, vector<1x1x2x32xf32>
    %38 = vector.shape_cast %37 : vector<1x1x2x32xf32> to vector<1x2x32xf32>
    %39 = arith.addf %35, %38 : vector<1x2x32xf32>
    %40 = math.tanh %39 : vector<1x2x32xf32>
    %41 = arith.index_cast %c3_i32 : i32 to index
    %c0_31 = arith.constant 0 : index
    %c0_32 = arith.constant 0 : index
    %c0_33 = arith.constant 0 : index
    %42 = vector.load %arg4[%41, %c0_31, %c0_32, %c0_33] : memref<8x1x2x32xf32, #tpu.memory_space<vmem>>, vector<1x1x2x32xf32>
    %43 = vector.shape_cast %42 : vector<1x1x2x32xf32> to vector<1x2x32xf32>
    %44 = vector.shape_cast %40 : vector<1x2x32xf32> to vector<1x1x2x32xf32>
    tpu.vector_store %arg4[%41, %c0_31, %c0_32, %c0_33], %44 {strides = array<i32>} : memref<8x1x2x32xf32, #tpu.memory_space<vmem>>, vector<1x1x2x32xf32>,
    %c4_i32 = arith.constant 4 : i32
    %cst_34 = arith.constant dense<0.000000e+00> : vector<1x2x32xf32>
    %45 = tpu.matmul %40, %3, %cst_34 {dimension_numbers = #tpu.dot_dimension_numbers<[2], [1], [1], [2], [0, 0, 0, 1, 1, 2], [0], [0]>} : vector<1x2x32xf32>, vector<1x32x32xf32>, vector<1x2x32xf32> -> vector<1x2x32xf32>
    %46 = arith.index_cast %c4_i32 : i32 to index
    %c0_35 = arith.constant 0 : index
    %c0_36 = arith.constant 0 : index
    %c0_37 = arith.constant 0 : index
    %47 = vector.load %arg2[%46, %c0_35, %c0_36, %c0_37] : memref<8x1x2x32xf32, #tpu.memory_space<vmem>>, vector<1x1x2x32xf32>
    %48 = vector.shape_cast %47 : vector<1x1x2x32xf32> to vector<1x2x32xf32>
    %49 = arith.addf %45, %48 : vector<1x2x32xf32>
    %50 = math.tanh %49 : vector<1x2x32xf32>
    %51 = arith.index_cast %c4_i32 : i32 to index
    %c0_38 = arith.constant 0 : index
    %c0_39 = arith.constant 0 : index
    %c0_40 = arith.constant 0 : index
    %52 = vector.load %arg4[%51, %c0_38, %c0_39, %c0_40] : memref<8x1x2x32xf32, #tpu.memory_space<vmem>>, vector<1x1x2x32xf32>
    %53 = vector.shape_cast %52 : vector<1x1x2x32xf32> to vector<1x2x32xf32>
    %54 = vector.shape_cast %50 : vector<1x2x32xf32> to vector<1x1x2x32xf32>
    tpu.vector_store %arg4[%51, %c0_38, %c0_39, %c0_40], %54 {strides = array<i32>} : memref<8x1x2x32xf32, #tpu.memory_space<vmem>>, vector<1x1x2x32xf32>,
    %c5_i32 = arith.constant 5 : i32
    %cst_41 = arith.constant dense<0.000000e+00> : vector<1x2x32xf32>
    %55 = tpu.matmul %50, %3, %cst_41 {dimension_numbers = #tpu.dot_dimension_numbers<[2], [1], [1], [2], [0, 0, 0, 1, 1, 2], [0], [0]>} : vector<1x2x32xf32>, vector<1x32x32xf32>, vector<1x2x32xf32> -> vector<1x2x32xf32>
    %56 = arith.index_cast %c5_i32 : i32 to index
    %c0_42 = arith.constant 0 : index
    %c0_43 = arith.constant 0 : index
    %c0_44 = arith.constant 0 : index
    %57 = vector.load %arg2[%56, %c0_42, %c0_43, %c0_44] : memref<8x1x2x32xf32, #tpu.memory_space<vmem>>, vector<1x1x2x32xf32>
    %58 = vector.shape_cast %57 : vector<1x1x2x32xf32> to vector<1x2x32xf32>
    %59 = arith.addf %55, %58 : vector<1x2x32xf32>
    %60 = math.tanh %59 : vector<1x2x32xf32>
    %61 = arith.index_cast %c5_i32 : i32 to index
    %c0_45 = arith.constant 0 : index
    %c0_46 = arith.constant 0 : index
    %c0_47 = arith.constant 0 : index
    %62 = vector.load %arg4[%61, %c0_45, %c0_46, %c0_47] : memref<8x1x2x32xf32, #tpu.memory_space<vmem>>, vector<1x1x2x32xf32>
    %63 = vector.shape_cast %62 : vector<1x1x2x32xf32> to vector<1x2x32xf32>
    %64 = vector.shape_cast %60 : vector<1x2x32xf32> to vector<1x1x2x32xf32>
    tpu.vector_store %arg4[%61, %c0_45, %c0_46, %c0_47], %64 {strides = array<i32>} : memref<8x1x2x32xf32, #tpu.memory_space<vmem>>, vector<1x1x2x32xf32>,
    %c6_i32 = arith.constant 6 : i32
    %cst_48 = arith.constant dense<0.000000e+00> : vector<1x2x32xf32>
    %65 = tpu.matmul %60, %3, %cst_48 {dimension_numbers = #tpu.dot_dimension_numbers<[2], [1], [1], [2], [0, 0, 0, 1, 1, 2], [0], [0]>} : vector<1x2x32xf32>, vector<1x32x32xf32>, vector<1x2x32xf32> -> vector<1x2x32xf32>
    %66 = arith.index_cast %c6_i32 : i32 to index
    %c0_49 = arith.constant 0 : index
    %c0_50 = arith.constant 0 : index
    %c0_51 = arith.constant 0 : index
    %67 = vector.load %arg2[%66, %c0_49, %c0_50, %c0_51] : memref<8x1x2x32xf32, #tpu.memory_space<vmem>>, vector<1x1x2x32xf32>
    %68 = vector.shape_cast %67 : vector<1x1x2x32xf32> to vector<1x2x32xf32>
    %69 = arith.addf %65, %68 : vector<1x2x32xf32>
    %70 = math.tanh %69 : vector<1x2x32xf32>
    %71 = arith.index_cast %c6_i32 : i32 to index
    %c0_52 = arith.constant 0 : index
    %c0_53 = arith.constant 0 : index
    %c0_54 = arith.constant 0 : index
    %72 = vector.load %arg4[%71, %c0_52, %c0_53, %c0_54] : memref<8x1x2x32xf32, #tpu.memory_space<vmem>>, vector<1x1x2x32xf32>
    %73 = vector.shape_cast %72 : vector<1x1x2x32xf32> to vector<1x2x32xf32>
    %74 = vector.shape_cast %70 : vector<1x2x32xf32> to vector<1x1x2x32xf32>
    tpu.vector_store %arg4[%71, %c0_52, %c0_53, %c0_54], %74 {strides = array<i32>} : memref<8x1x2x32xf32, #tpu.memory_space<vmem>>, vector<1x1x2x32xf32>,
    %c7_i32 = arith.constant 7 : i32
    %cst_55 = arith.constant dense<0.000000e+00> : vector<1x2x32xf32>
    %75 = tpu.matmul %70, %3, %cst_55 {dimension_numbers = #tpu.dot_dimension_numbers<[2], [1], [1], [2], [0, 0, 0, 1, 1, 2], [0], [0]>} : vector<1x2x32xf32>, vector<1x32x32xf32>, vector<1x2x32xf32> -> vector<1x2x32xf32>
    %76 = arith.index_cast %c7_i32 : i32 to index
    %c0_56 = arith.constant 0 : index
    %c0_57 = arith.constant 0 : index
    %c0_58 = arith.constant 0 : index
    %77 = vector.load %arg2[%76, %c0_56, %c0_57, %c0_58] : memref<8x1x2x32xf32, #tpu.memory_space<vmem>>, vector<1x1x2x32xf32>
    %78 = vector.shape_cast %77 : vector<1x1x2x32xf32> to vector<1x2x32xf32>
    %79 = arith.addf %75, %78 : vector<1x2x32xf32>
    %80 = math.tanh %79 : vector<1x2x32xf32>
    %81 = arith.index_cast %c7_i32 : i32 to index
    %c0_59 = arith.constant 0 : index
    %c0_60 = arith.constant 0 : index
    %c0_61 = arith.constant 0 : index
    %82 = vector.load %arg4[%81, %c0_59, %c0_60, %c0_61] : memref<8x1x2x32xf32, #tpu.memory_space<vmem>>, vector<1x1x2x32xf32>
    %83 = vector.shape_cast %82 : vector<1x1x2x32xf32> to vector<1x2x32xf32>
    %84 = vector.shape_cast %80 : vector<1x2x32xf32> to vector<1x1x2x32xf32>
    tpu.vector_store %arg4[%81, %c0_59, %c0_60, %c0_61], %84 {strides = array<i32>} : memref<8x1x2x32xf32, #tpu.memory_space<vmem>>, vector<1x1x2x32xf32>,
    %c8_i32 = arith.constant 8 : i32
    %c0_62 = arith.constant 0 : index
    %c0_63 = arith.constant 0 : index
    %c0_64 = arith.constant 0 : index
    %85 = vector.load %arg5[%c0_62, %c0_63, %c0_64] : memref<1x2x32xf32, #tpu.memory_space<vmem>>, vector<1x2x32xf32>
    tpu.vector_store %arg5[%c0_62, %c0_63, %c0_64], %80 {strides = array<i32>} : memref<1x2x32xf32, #tpu.memory_space<vmem>>, vector<1x2x32xf32>,
    return
  }
  func.func @transform_0(%arg0: i32, %arg1: i32) -> (i32, i32, i32, i32) {
    %c0_i32 = arith.constant 0 : i32
    %c0_i32_0 = arith.constant 0 : i32
    %c0_i32_1 = arith.constant 0 : i32
    return %arg1, %arg0, %c0_i32, %c0_i32_0 : i32, i32, i32, i32
  }
  func.func @transform_1(%arg0: i32, %arg1: i32) -> (i32, i32, i32) {
    %c0_i32 = arith.constant 0 : i32
    %c0_i32_0 = arith.constant 0 : i32
    %c0_i32_1 = arith.constant 0 : i32
    return %arg0, %c0_i32, %c0_i32_0 : i32, i32, i32
  }
  func.func @transform_2(%arg0: i32, %arg1: i32) -> (i32, i32, i32, i32) {
    %c0_i32 = arith.constant 0 : i32
    %c0_i32_0 = arith.constant 0 : i32
    %c0_i32_1 = arith.constant 0 : i32
    return %arg1, %arg0, %c0_i32, %c0_i32_0 : i32, i32, i32, i32
  }
}

</mosaic_0001>

<bundles_post_ra>
// kernel: tpu_custom_call.1
= control target key start
LH: loop header
LB: loop body
LE: loop exit
PB: predicated region body
PF: predicated region fallthrough
CT: control target
= control target key end

     0   :  { %7 = vsyncpa [#allocation4], 0  ;;  %s1114_s0 = inlined_call_operand.hbm [shape: f32[8,1,2,32], index: 0, kind: input, shape index: {}]   ;;  %s1115_s1 = inlined_call_operand.hbm [shape: f32[1,32,32], index: 1, kind: input, shape index: {}]   ;;  %s1116_s2 = inlined_call_operand.hbm [shape: f32[8,1,2,32], index: 2, kind: output, shape index: {}]  }
   0x1   :  { %8 = vsyncpa [#allocation7], 0 }
   0x2   :  { %9 = vsyncpa [#allocation5], 0  ;;  %s976_s9 = smov [#allocation3]   ;;  %s904_s13 = scalar_lea.hbm %s1114_s0, 256 }
   0x3   :  { %s15_s10 = sshll.u32 %s976_s9, 4  ;;  %p905_p0 = scmp.ne.s32.totalorder %s1114_s0, %s904_s13  ;;  %s16_s10 = int_to_ptr.vmem [resolvable:$true] %s15_s10 }
   0x4   :  { %p908_p1 = scmp.lt.u32.totalorder %s904_s13, %s1114_s0 }
   0x6   :  { %p910_p2 = pnand %p908_p1, %p905_p0 }
   0x8   :  { %913 = shalt.err (!%p910_p2)
}
   0x9   :  { %s914_s18 = scalar_lea.vmem %s16_s10, 256  ;;  %p919_p4 = scmp.lt.s32.totalorder %s16_s10, %s16_s10 }
   0xa   :  { %p915_p3 = scmp.ne.s32.totalorder %s16_s10, %s914_s18  ;;  %p920_p5 = scmp.lt.s32.totalorder %s914_s18, %s914_s18 }
   0xc   :  { %p921_p6 = por %p920_p5, %p919_p4 }
   0xe   :  { %p922_p7 = pnand %p921_p6, %p915_p3 }
  0x10   :  { %925 = shalt.err (!%p922_p7)
}
  0x11   :  { %s977_s19 = smov 32   ;;  %s978_s20 = smov 2  }
  0x12   :  { %21 = dma.hbm_to_vmem [thread:$0]  %s1114_s0, 256, %s16_s10, [#allocation4], %s977_s19, %s977_s19, %s978_s20  }
  0x13   :  { %s979_s23 = smov [#allocation6]   ;;  %s926_s27 = scalar_lea.hbm %s1115_s1, 512 }
  0x14   :  { %s27_s24 = sshll.u32 %s979_s23, 4  ;;  %p927_p8 = scmp.ne.s32.totalorder %s1115_s1, %s926_s27  ;;  %s28_s24 = int_to_ptr.vmem [resolvable:$true] %s27_s24 }
  0x15   :  { %p930_p9 = scmp.lt.u32.totalorder %s926_s27, %s1115_s1 }
  0x17   :  { %p932_p10 = pnand %p930_p9, %p927_p8 }
  0x19   :  { %935 = shalt.err (!%p932_p10)
}
  0x1a   :  { %s936_s4 = scalar_lea.vmem %s28_s24, 512  ;;  %p941_p12 = scmp.lt.s32.totalorder %s28_s24, %s28_s24 }
  0x1b   :  { %p937_p11 = scmp.ne.s32.totalorder %s28_s24, %s936_s4  ;;  %p942_p13 = scmp.lt.s32.totalorder %s936_s4, %s936_s4 }
  0x1d   :  { %p943_p0 = por %p942_p13, %p941_p12 }
  0x1f   :  { %p944_p1 = pnand %p943_p0, %p937_p11 }
  0x21   :  { %947 = shalt.err (!%p944_p1)
}
  0x22   :  { %s980_s0 = smov 128   ;;  %s981_s5 = smov 8  }
  0x23   :  { %33 = dma.hbm_to_vmem [thread:$0]  %s1115_s1, 512, %s28_s24, [#allocation7], %s980_s0, %s980_s0, %s981_s5  }
  0x24   :  { %970 = dma.done.wait [#allocation4], 256  }
  0x25   :  { %971 = vsyncadd [#allocation4], 4294967040 }
  0x26   :  { %972 = dma.done.wait [#allocation7], 512  }
  0x27   :  { %973 = vsyncadd [#allocation7], 4294966784  ;;  %vm44_vm0 = vcmask 254976   ;;  %v982_v0 = vmov 0.0|0.0   ;;  %vm983_vm1 = vmmov 0   ;;  %v984_v1 = vmov 0.0  }
  0x28   :  { %830 = vmatprep.subr.bf16.mxu0 %v982_v0  ;;  %750 = vmatprep.mubr.msk.f32.mxu0 %vm983_vm1, %v984_v1  ;;  %45 = vst.msk [vmem:[#allocation2] sm:$0x3] %vm44_vm0, %v984_v1  ;;  %v46_v2 = vld [vmem:[#allocation6] sm:$0xff]  ;;  %v47_v3 = vld [vmem:[#allocation6 + $0x8] sm:$0xff]  ;;  %v48_v4 = vld [vmem:[#allocation6 + $0x10] sm:$0xff]  ;;  %vm52_vm2 = vcmask 261120  }
  0x29   :  { %836 = vmatprep.subr.bf16.mxu1 %v982_v0  ;;  %761 = vmatprep.mubr.msk.f32.mxu1 %vm983_vm1, %v984_v1  ;;  %v1036_v5 = vpack.c.bf16 %v47_v3, %v46_v2  ;;  %v49_v6 = vld [vmem:[#allocation6 + $0x18] sm:$0xff]  ;;  %v51_v9 = vld [vmem:[#allocation3] sm:$0x3]  ;;  %v130_v14 = vld [vmem:[#allocation3 + $0x2] sm:$0x3]  ;;  %s985_s1 = smov [#allocation8]  }
  0x2a   :  { %v1039_v7 = vpack.c.bf16 %v49_v6, %v48_v4  ;;  %v208_v19 = vld [vmem:[#allocation3 + $0x4] sm:$0x3]  ;;  %v286_v24 = vld [vmem:[#allocation3 + $0x6] sm:$0x3]  ;;  %v364_v29 = vld [vmem:[#allocation3 + $0x8] sm:$0x3] }
  0x2b   :  { %832 = vmatpush3.bf16.msra.mxu0 %v1036_v5  ;;  %838 = vmatpush3.bf16.msra.mxu1 %v1036_v5  ;;  %v442_v34 = vld [vmem:[#allocation3 + $0xa] sm:$0x3]  ;;  %v520_v39 = vld [vmem:[#allocation3 + $0xc] sm:$0x3]  ;;  %v598_v44 = vld [vmem:[#allocation3 + $0xe] sm:$0x3] }
  0x2c   :  { %833 = vmatprep.subr.bf16.mxu0 %v982_v0  ;;  %839 = vmatprep.subr.bf16.mxu1 %v982_v0  ;;  %s681_s8 = sshll.u32 %s985_s1, 4  ;;  %s682_s8 = int_to_ptr.vmem [resolvable:$true] %s681_s8 }
  0x2d   :  { %s948_s9 = scalar_lea.vmem %s682_s8, 256  ;;  %p953_p3 = scmp.lt.s32.totalorder %s682_s8, %s682_s8 }
  0x2e   :  { %p949_p2 = scmp.ne.s32.totalorder %s682_s8, %s948_s9  ;;  %p954_p4 = scmp.lt.s32.totalorder %s948_s9, %s948_s9 }
  0x2f   :  { %835 = vmatpush3.bf16.msra.mxu0 %v1039_v7  ;;  %v50_v8 = vld [vmem:[#allocation2] sm:$0x3]  ;;  %841 = vmatpush3.bf16.msra.mxu1 %v1039_v7 }
  0x30   :  { %842 = vmatprep.subr.bf16.mxu0 %v982_v0  ;;  %848 = vmatprep.subr.bf16.mxu1 %v982_v0  ;;  %p955_p5 = por %p954_p4, %p953_p3 }
  0x32   :  { %751 = vmatmul.mubr.msk.f32.vlgmr.msra.gmra.mrb[0].mxu0 %vm52_vm2, %v50_v8  ;;  %p956_p6 = pnand %p955_p5, %p949_p2 }
  0x33   :  { %844 = vmatpush3.bf16.msra.mxu0 %v1036_v5  ;;  %772 = vmatprep.mubr.msk.f32.mxu0 %vm983_vm1, %v984_v1 }
  0x34   :  { %845 = vmatprep.subr.bf16.mxu0 %v982_v0 }
  0x37   :  { %847 = vmatpush3.bf16.msra.mxu0 %v1039_v7 }
  0x38   :  { %854 = vmatprep.subr.bf16.mxu0 %v982_v0 }
 0x105   :  { %v122_v10 = vpop.f32.mrb[0].mxu0 }
 0x106   :  { %v123_v11 = vadd.f32 %v122_v10, %v51_v9  ;;  %v752_v12 = vpop.f32.mrb[1].mxu0 }
 0x108   :  { %888 = vtanh.f32 %v123_v11 }
 0x112   :  { %v889_v13 = vpop.eup %888 }
 0x113   :  { %128 = vst.msk [vmem:[#allocation8] sm:$0x3] %vm44_vm0, %v889_v13  ;;  %762 = vmatmul.mubr.msk.f32.vlgmr.msra.gmra.mrb[0].mxu1 %vm52_vm2, %v889_v13 }
 0x114   :  { %850 = vmatpush3.bf16.msra.mxu1 %v1036_v5  ;;  %783 = vmatprep.mubr.msk.f32.mxu1 %vm983_vm1, %v984_v1 }
 0x115   :  { %851 = vmatprep.subr.bf16.mxu1 %v982_v0 }
 0x118   :  { %853 = vmatpush3.bf16.msra.mxu1 %v1039_v7 }
 0x119   :  { %860 = vmatprep.subr.bf16.mxu1 %v982_v0 }
 0x1e6   :  { %v200_v15 = vpop.f32.mrb[0].mxu1 }
 0x1e7   :  { %v201_v16 = vadd.f32 %v200_v15, %v130_v14  ;;  %v763_v17 = vpop.f32.mrb[1].mxu1 }
 0x1e9   :  { %890 = vtanh.f32 %v201_v16 }
 0x1f3   :  { %v891_v18 = vpop.eup %890 }
 0x1f4   :  { %206 = vst.msk [vmem:[#allocation8 + $0x2] sm:$0x3] %vm44_vm0, %v891_v18  ;;  %773 = vmatmul.mubr.msk.f32.vlgmr.msra.gmra.mrb[2].mxu0 %vm52_vm2, %v891_v18 }
 0x1f5   :  { %856 = vmatpush3.bf16.msra.mxu0 %v1036_v5  ;;  %794 = vmatprep.mubr.msk.f32.mxu0 %vm983_vm1, %v984_v1 }
 0x1f6   :  { %857 = vmatprep.subr.bf16.mxu0 %v982_v0 }
 0x1f9   :  { %859 = vmatpush3.bf16.msra.mxu0 %v1039_v7 }
 0x1fa   :  { %866 = vmatprep.subr.bf16.mxu0 %v982_v0 }
 0x2c7   :  { %v278_v20 = vpop.f32.mrb[2].mxu0 }
 0x2c8   :  { %v279_v21 = vadd.f32 %v278_v20, %v208_v19  ;;  %v774_v22 = vpop.f32.mrb[3].mxu0 }
 0x2ca   :  { %892 = vtanh.f32 %v279_v21 }
 0x2d4   :  { %v893_v23 = vpop.eup %892 }
 0x2d5   :  { %284 = vst.msk [vmem:[#allocation8 + $0x4] sm:$0x3] %vm44_vm0, %v893_v23  ;;  %784 = vmatmul.mubr.msk.f32.vlgmr.msra.gmra.mrb[2].mxu1 %vm52_vm2, %v893_v23 }
 0x2d6   :  { %862 = vmatpush3.bf16.msra.mxu1 %v1036_v5  ;;  %805 = vmatprep.mubr.msk.f32.mxu1 %vm983_vm1, %v984_v1 }
 0x2d7   :  { %863 = vmatprep.subr.bf16.mxu1 %v982_v0 }
 0x2da   :  { %865 = vmatpush3.bf16.msra.mxu1 %v1039_v7 }
 0x2db   :  { %872 = vmatprep.subr.bf16.mxu1 %v982_v0 }
 0x3a8   :  { %v356_v25 = vpop.f32.mrb[2].mxu1 }
 0x3a9   :  { %v357_v26 = vadd.f32 %v356_v25, %v286_v24  ;;  %v785_v27 = vpop.f32.mrb[3].mxu1 }
 0x3ab   :  { %894 = vtanh.f32 %v357_v26 }
 0x3b5   :  { %v895_v28 = vpop.eup %894 }
 0x3b6   :  { %362 = vst.msk [vmem:[#allocation8 + $0x6] sm:$0x3] %vm44_vm0, %v895_v28  ;;  %795 = vmatmul.mubr.msk.f32.vlgmr.msra.gmra.mrb[4].mxu0 %vm52_vm2, %v895_v28 }
 0x3b7   :  { %868 = vmatpush3.bf16.msra.mxu0 %v1036_v5  ;;  %816 = vmatprep.mubr.msk.f32.mxu0 %vm983_vm1, %v984_v1 }
 0x3b8   :  { %869 = vmatprep.subr.bf16.mxu0 %v982_v0 }
 0x3bb   :  { %871 = vmatpush3.bf16.msra.mxu0 %v1039_v7 }
 0x489   :  { %v434_v30 = vpop.f32.mrb[4].mxu0 }
 0x48a   :  { %v435_v31 = vadd.f32 %v434_v30, %v364_v29  ;;  %v796_v32 = vpop.f32.mrb[5].mxu0 }
 0x48c   :  { %896 = vtanh.f32 %v435_v31 }
 0x496   :  { %v897_v33 = vpop.eup %896 }
 0x497   :  { %440 = vst.msk [vmem:[#allocation8 + $0x8] sm:$0x3] %vm44_vm0, %v897_v33  ;;  %806 = vmatmul.mubr.msk.f32.vlgmr.msra.gmra.mrb[4].mxu1 %vm52_vm2, %v897_v33 }
 0x498   :  { %874 = vmatpush3.bf16.msra.mxu1 %v1036_v5  ;;  %827 = vmatprep.mubr.msk.f32.mxu1 %vm983_vm1, %v984_v1 }
 0x499   :  { %875 = vmatprep.subr.bf16.mxu1 %v982_v0 }
 0x49c   :  { %877 = vmatpush3.bf16.msra.mxu1 %v1039_v7 }
 0x56a   :  { %v512_v35 = vpop.f32.mrb[4].mxu1 }
 0x56b   :  { %v513_v36 = vadd.f32 %v512_v35, %v442_v34  ;;  %v807_v37 = vpop.f32.mrb[5].mxu1 }
 0x56d   :  { %898 = vtanh.f32 %v513_v36 }
 0x577   :  { %v899_v38 = vpop.eup %898 }
 0x578   :  { %518 = vst.msk [vmem:[#allocation8 + $0xa] sm:$0x3] %vm44_vm0, %v899_v38  ;;  %817 = vmatmul.mubr.msk.f32.vlgmr.msra.gmra.mrb[6].mxu0 %vm52_vm2, %v899_v38 }
 0x64b   :  { %v590_v40 = vpop.f32.mrb[6].mxu0 }
 0x64c   :  { %v591_v41 = vadd.f32 %v590_v40, %v520_v39  ;;  %v818_v42 = vpop.f32.mrb[7].mxu0 }
 0x64e   :  { %900 = vtanh.f32 %v591_v41 }
 0x658   :  { %v901_v43 = vpop.eup %900 }
 0x659   :  { %596 = vst.msk [vmem:[#allocation8 + $0xc] sm:$0x3] %vm44_vm0, %v901_v43  ;;  %828 = vmatmul.mubr.msk.f32.vlgmr.msra.gmra.mrb[6].mxu1 %vm52_vm2, %v901_v43 }
 0x72c   :  { %v668_v45 = vpop.f32.mrb[6].mxu1 }
 0x72d   :  { %v669_v46 = vadd.f32 %v668_v45, %v598_v44  ;;  %v829_v47 = vpop.f32.mrb[7].mxu1 }
 0x72f   :  { %902 = vtanh.f32 %v669_v46 }
 0x739   :  { %v903_v48 = vpop.eup %902 }
 0x73a   :  { %675 = vst.msk [vmem:[#allocation2] sm:$0x3] %vm44_vm0, %v903_v48  ;;  %674 = vst.msk [vmem:[#allocation8 + $0xe] sm:$0x3] %vm44_vm0, %v903_v48 }
 0x73b   :  { %959 = shalt.err (!%p956_p6)
}
 0x73c   :  { %s960_s12 = scalar_lea.hbm %s1116_s2, 256 }
 0x73d   :  { %p961_p7 = scmp.ne.s32.totalorder %s1116_s2, %s960_s12  ;;  %p964_p8 = scmp.lt.u32.totalorder %s960_s12, %s1116_s2 }
 0x73f   :  { %p966_p9 = pnand %p964_p8, %p961_p7 }
 0x741   :  { %969 = shalt.err (!%p966_p9)
}
 0x742   :  { %687 = dma.vmem_to_hbm [thread:$0]  %s682_s8, 256, %s1116_s2, [#allocation5], %s977_s19, %s977_s19, %s978_s20  }
 0x743   :  { %974 = dma.done.wait [#allocation5], 256  }
 0x744   :  { %975 = vsyncadd [#allocation5], 4294967040 }
 0x745   :  { %691 = vsyncpa [#allocation4], 1 }
 0x746   :  { %692 = vsyncpa [#allocation7], 1 }
 0x747   :  { %693 = vsyncpa [#allocation5], 1 }

</bundles_post_ra>
